<compile_context>
chip_gen: v5e
topology: v5e:2x2
jax: 0.10.0
libtpu: 0.0.40
codegen_flags: <defaults>
</compile_context>

<pallas_src>
import jax
import jax.numpy as jnp
from jax.experimental import pallas as pl
from jax.experimental.pallas import tpu as pltpu


# Tile targets: sublane axis multiple of 8, lane axis multiple of 128.
_TILE_ROWS = 512
_TILE_COLS = 1024
_LANES = 128


# ---------------------------------------------------------------------------
# Kernels (tile-local, elementwise)
# ---------------------------------------------------------------------------
def _swish_colscale_kernel(x_ref, beta_ref, o_ref):
    """x tile (tr, tc), beta tile (1, tc) broadcast over rows (per-column beta)."""
    x = x_ref[...].astype(jnp.float32)
    b = beta_ref[...].astype(jnp.float32)          # (1, tc)
    o_ref[...] = (x * jax.nn.sigmoid(b * x)).astype(o_ref.dtype)


def _swish_rowscale_kernel(x_ref, beta_ref, o_ref):
    """x tile (tr, tc), beta tile (tr, 1) broadcast over lanes (per-row beta)."""
    x = x_ref[...].astype(jnp.float32)
    b = beta_ref[...].astype(jnp.float32)          # (tr, 1)
    o_ref[...] = (x * jax.nn.sigmoid(b * x)).astype(o_ref.dtype)


# ---------------------------------------------------------------------------
# Tiled pallas_call plumbing
# ---------------------------------------------------------------------------
def _tile(dim, target):
    # Full-extent blocks are always legal; otherwise use the aligned target
    # (already a multiple of (8, 128)) and let pl.cdiv mask the partial tail.
    return dim if dim <= target else target


def _tiled_call(kernel, x2, beta2, beta_follows_rows):
    R, S = x2.shape
    tr = _tile(R, _TILE_ROWS)
    tc = _tile(S, _TILE_COLS)
    grid = (pl.cdiv(R, tr), pl.cdiv(S, tc))

    if beta_follows_rows:
        beta_spec = pl.BlockSpec((tr, 1), lambda i, j: (i, 0))
    else:
        beta_spec = pl.BlockSpec((1, tc), lambda i, j: (0, j))

    itemsize = jnp.dtype(x2.dtype).itemsize
    cost = pl.CostEstimate(
        flops=4 * R * S,
        transcendentals=R * S,
        bytes_accessed=2 * R * S * itemsize
        + beta2.size * jnp.dtype(beta2.dtype).itemsize,
    )

    return pl.pallas_call(
        kernel,
        out_shape=jax.ShapeDtypeStruct((R, S), x2.dtype),
        grid=grid,
        in_specs=[
            pl.BlockSpec((tr, tc), lambda i, j: (i, j)),
            beta_spec,
        ],
        out_specs=pl.BlockSpec((tr, tc), lambda i, j: (i, j)),
        compiler_params=pltpu.CompilerParams(
            dimension_semantics=("parallel", "parallel"),
        ),
        cost_estimate=cost,
    )(x2, beta2)


def _row_fold_factor(n_rows, n_cols):
    """Largest divisor f of n_rows with f*n_cols <= _TILE_COLS, used only when
    the lane axis is narrower than a full 128-lane vreg (lane-densify stores)."""
    if n_cols >= _LANES or n_rows <= 1:
        return 1
    limit = min(n_rows, _TILE_COLS // max(n_cols, 1))
    for f in range(limit, 0, -1):
        if n_rows % f == 0:
            return f
    return 1


def _swish_colscale(x2, beta_row):
    """x2: (R, S), beta_row: (S,) per-column scale.  Folds rows into the lane
    axis when S < 128 so the output tile is lane-dense (unmasked vst)."""
    R, S = x2.shape
    f = _row_fold_factor(R, S)
    if f > 1:
        x2f = x2.reshape(R // f, f * S)
        beta_f = jnp.tile(beta_row, f).reshape(1, f * S)
        y = _tiled_call(_swish_colscale_kernel, x2f, beta_f,
                        beta_follows_rows=False)
        return y.reshape(R, S)
    beta2 = beta_row.reshape(1, S)
    return _tiled_call(_swish_colscale_kernel, x2, beta2,
                       beta_follows_rows=False)


# ---------------------------------------------------------------------------
# Public wrapper (matches Swish.forward)
# ---------------------------------------------------------------------------
def swish_pallas(x, beta):
    """Swish with (optionally learnable) per-dim beta, matching PyTorch Swish."""
    x = jnp.asarray(x)
    beta = jnp.asarray(beta, dtype=x.dtype).reshape(-1)

    if x.ndim == 2:
        N, D = x.shape
        if beta.size not in (1, D):
            raise ValueError(f"beta has {beta.size} elements; expected 1 or {D}.")
        beta_row = jnp.broadcast_to(beta, (D,)) if beta.size == 1 else beta
        return _swish_colscale(x, beta_row)

    elif x.ndim == 4:
        N, C, H, W = x.shape
        if beta.size not in (1, C):
            raise ValueError(f"beta has {beta.size} elements; expected 1 or {C}.")
        beta_c = jnp.broadcast_to(beta, (C,)) if beta.size == 1 else beta
        hw = H * W

        if hw >= _LANES:
            # Lane-dense view: (N*C, H*W); beta becomes a per-row scale that
            # follows the row-tile (tiny (tr,1) block, no full-beta re-DMA).
            x2 = x.reshape(N * C, hw)
            beta_rows = jnp.broadcast_to(beta_c[None, :], (N, C)).reshape(N * C, 1)
            y2 = _tiled_call(_swish_rowscale_kernel, x2, beta_rows,
                             beta_follows_rows=True)
            return y2.reshape(N, C, H, W)
        else:
            # Narrow spatial extent: fold C*H*W into the lane axis instead so
            # stores stay unmasked; beta repeats H*W times per channel.
            x2 = x.reshape(N, C * hw)
            beta_row = jnp.repeat(beta_c, hw)
            y2 = _swish_colscale(x2, beta_row)
            return y2.reshape(N, C, H, W)

    else:
        raise ValueError(f"Unsupported input rank {x.ndim}; expected 2 or 4.")


# ---------------------------------------------------------------------------
# Reference (pure jnp) for verification
# ---------------------------------------------------------------------------
def swish_ref(x, beta):
    beta = jnp.asarray(beta, dtype=x.dtype)
    if x.ndim == 2:
        return x * jax.nn.sigmoid(beta[None, :] * x)
    return x * jax.nn.sigmoid(beta[None, :, None, None] * x)


if __name__ == "__main__":
    key = jax.random.PRNGKey(0)
    k1, k2, k3, k4, k5 = jax.random.split(key, 5)

    # --- 4-D case: Swish(dim=4) on NCHW input (2, 4, 16, 16) ---
    C = 4
    beta_4d = jnp.ones((C,), dtype=jnp.float32)
    beta_4d = beta_4d + 0.1 * jax.random.normal(k3, (C,), dtype=jnp.float32)
    x4 = jax.random.normal(k1, (2, C, 16, 16), dtype=jnp.float32)

    y4 = swish_pallas(x4, beta_4d)
    jax.block_until_ready(y4)
    assert jnp.allclose(y4, swish_ref(x4, beta_4d), atol=1e-5, rtol=1e-5), \
        "4-D Swish mismatch"

    # --- 2-D case: Swish(dim=32) on (2, 32) input (exercises row folding) ---
    D = 32
    beta_2d = jnp.ones((D,), dtype=jnp.float32)
    beta_2d = beta_2d + 0.1 * jax.random.normal(k3, (D,), dtype=jnp.float32)
    x2 = jax.random.normal(k2, (2, D), dtype=jnp.float32)

    y2 = swish_pallas(x2, beta_2d)
    jax.block_until_ready(y2)
    assert jnp.allclose(y2, swish_ref(x2, beta_2d), atol=1e-5, rtol=1e-5), \
        "2-D Swish mismatch"

    # --- 2-D case with more rows (fold factor > 1, lane-dense path) ---
    x2b = jax.random.normal(k5, (16, D), dtype=jnp.float32)
    y2b = swish_pallas(x2b, beta_2d)
    jax.block_until_ready(y2b)
    assert jnp.allclose(y2b, swish_ref(x2b, beta_2d), atol=1e-5, rtol=1e-5), \
        "2-D folded Swish mismatch"

    # --- 4-D case exercising the lane-axis grid (H*W = 4096 > 1024 tile) ---
    x4g = jax.random.normal(k4, (2, C, 64, 64), dtype=jnp.float32)
    y4g = swish_pallas(x4g, beta_4d)
    jax.block_until_ready(y4g)
    assert jnp.allclose(y4g, swish_ref(x4g, beta_4d), atol=1e-5, rtol=1e-5), \
        "4-D gridded Swish mismatch"

    # --- 4-D case with narrow spatial extent (H*W = 16 < 128 lanes) ---
    x4s = jax.random.normal(k4, (2, C, 4, 4), dtype=jnp.float32)
    y4s = swish_pallas(x4s, beta_4d)
    jax.block_until_ready(y4s)
    assert jnp.allclose(y4s, swish_ref(x4s, beta_4d), atol=1e-5, rtol=1e-5), \
        "4-D narrow-spatial Swish mismatch"

    print("KERNEL_OK")
</pallas_src>

<mosaic_0001>
module attributes {stable_mosaic.version = 11 : i64} {
  func.func @_swish_rowscale_kernel(%arg0: i32, %arg1: i32, %arg2: memref<8x256xf32, #tpu.memory_space<vmem>>, %arg3: memref<8x1xf32, #tpu.memory_space<vmem>>, %arg4: memref<8x256xf32, #tpu.memory_space<vmem>>) attributes {dimension_semantics = [#tpu.dimension_semantics<parallel>, #tpu.dimension_semantics<parallel>], iteration_bounds = array<i64: 1, 1>, scalar_prefetch = 0 : i64, scratch_operands = 0 : i64, tpu.core_type = #tpu.core_type<tc>, window_params = [{transform_indices = @transform_0, window_bounds = array<i64: 8, 256>}, {transform_indices = @transform_1, window_bounds = array<i64: 8, 1>}, {transform_indices = @transform_2, window_bounds = array<i64: 8, 256>}]} {
    %c0 = arith.constant 0 : index
    %c0_0 = arith.constant 0 : index
    %0 = vector.load %arg2[%c0, %c0_0] : memref<8x256xf32, #tpu.memory_space<vmem>>, vector<8x256xf32>
    %c0_1 = arith.constant 0 : index
    %c0_2 = arith.constant 0 : index
    %1 = vector.load %arg3[%c0_1, %c0_2] : memref<8x1xf32, #tpu.memory_space<vmem>>, vector<8x1xf32>
    %2 = vector.broadcast %1 : vector<8x1xf32> to vector<8x256xf32>
    %3 = arith.mulf %2, %0 : vector<8x256xf32>
    %4 = arith.negf %3 : vector<8x256xf32>
    %5 = math.exp %4 : vector<8x256xf32>
    %cst = arith.constant 1.000000e+00 : f32
    %6 = vector.broadcast %cst : f32 to vector<8x256xf32>
    %7 = arith.addf %6, %5 : vector<8x256xf32>
    %8 = arith.divf %6, %7 : vector<8x256xf32>
    %9 = arith.mulf %0, %8 : vector<8x256xf32>
    %c0_3 = arith.constant 0 : index
    %c0_4 = arith.constant 0 : index
    %10 = vector.load %arg4[%c0_3, %c0_4] : memref<8x256xf32, #tpu.memory_space<vmem>>, vector<8x256xf32>
    tpu.vector_store %arg4[%c0_3, %c0_4], %9 {strides = array<i32>} : memref<8x256xf32, #tpu.memory_space<vmem>>, vector<8x256xf32>,
    return
  }
  func.func @transform_0(%arg0: i32, %arg1: i32) -> (i32, i32) {
    %c0_i32 = arith.constant 0 : i32
    return %arg0, %arg1 : i32, i32
  }
  func.func @transform_1(%arg0: i32, %arg1: i32) -> (i32, i32) {
    %c0_i32 = arith.constant 0 : i32
    %c0_i32_0 = arith.constant 0 : i32
    return %arg0, %c0_i32 : i32, i32
  }
  func.func @transform_2(%arg0: i32, %arg1: i32) -> (i32, i32) {
    %c0_i32 = arith.constant 0 : i32
    return %arg0, %arg1 : i32, i32
  }
}

</mosaic_0001>

<bundles_post_ra>
// kernel: tpu_custom_call.1
= control target key start
LH: loop header
LB: loop body
LE: loop exit
PB: predicated region body
PF: predicated region fallthrough
CT: control target
= control target key end

     0   :  { %7 = vsyncpa [#allocation3], 0  ;;  %s188_s0 = inlined_call_operand.hbm [shape: f32[8,256], index: 0, kind: input, shape index: {}]   ;;  %s189_s1 = inlined_call_operand.vmem [shape: f32[8,1], index: 1, kind: input, shape index: {}]   ;;  %s190_s2 = inlined_call_operand.hbm [shape: f32[8,256], index: 2, kind: output, shape index: {}]  }
   0x1   :  { %8 = vsyncpa [#allocation4], 0  ;;  %s14_s11 = sshll.u32 %s188_s0, 4  ;;  %s161_s12 = smov [#allocation2]   ;;  %s15_s11 = int_to_ptr.hbm [resolvable:$true] %s14_s11 }
   0x2   :  { %s16_s13 = sshll.u32 %s161_s12, 4  ;;  %s17_s13 = int_to_ptr.vmem [resolvable:$true] %s16_s13 }
   0x3   :  { %19 = dma.hbm_to_vmem [thread:$0]  %s15_s11, 256, %s17_s13, [#allocation3]  }
   0x4   :  { %157 = dma.done.wait [#allocation3], 256  }
   0x5   :  { %158 = vsyncadd [#allocation3], 4294967040  ;;  %v162_v0 = vmov 0   ;;  %v28_v1 = vld [vmem:[%s189_s1] sm:$0xff]  ;;  %v27_v3 = vld [vmem:[#allocation2 + $0x8] sm:$0xff]  ;;  %s163_s0 = smov [#allocation5]  }
   0x6   :  { %100 = vset.pattern.permute.xlu0 %v162_v0  ;;  %v26_v2 = vld [vmem:[#allocation2] sm:$0xff]  ;;  %s83_s1 = sshll.u32 %s163_s0, 4  ;;  %s85_s18 = sshll.u32 %s190_s2, 4  ;;  %s84_s1 = int_to_ptr.vmem [resolvable:$true] %s83_s1  ;;  %s86_s18 = int_to_ptr.hbm [resolvable:$true] %s85_s18 }
   0x7   :  { %31 = vperm.xlu0 %100, %v28_v1  }
  0x79   :  { %v32_v4 = vpop.permute.xlu0 %31 }
  0x7a   :  { %v34_v5 = vmul.f32 %v32_v4, %v26_v2  ;;  %v35_v6 = vmul.f32 %v32_v4, %v27_v3 }
  0x7c   :  { %v95_v7 = vmul.f32 -1.442695, %v34_v5  ;;  %v96_v8 = vmul.f32 -1.442695, %v35_v6 }
  0x7e   :  { %101 = vpow2.f32 %v95_v7 }
  0x7f   :  { %103 = vpow2.f32 %v96_v8 }
  0x84   :  { %v102_v9 = vpop.eup %101 }
  0x85   :  { %v104_v10 = vpop.eup %103  ;;  %v42_v11 = vadd.f32 1.0, %v102_v9 }
  0x86   :  { %v43_v12 = vadd.f32 1.0, %v104_v10 }
  0x87   :  { %105 = vrcp.f32 %v42_v11  ;;  %v55_v18 = vand.u32 2147483648, %v42_v11  ;;  %v53_v21 = vand.u32 2147483647, %v42_v11  ;;  %vm49_vm2 = vweird.f32 %v42_v11 }
  0x88   :  { %107 = vrcp.f32 %v43_v12  ;;  %v70_v22 = vand.u32 2147483648, %v43_v12  ;;  %v68_v24 = vand.u32 2147483647, %v43_v12  ;;  %vm64_vm4 = vweird.f32 %v43_v12 }
  0x89   :  { %v56_v26 = vor.u32 1.1754944e-38, %v55_v18  ;;  %vm54_vm5 = vcmp.eq.f32.partialorder %v53_v21, 8.507059e+37 }
  0x8a   :  { %v71_v29 = vor.u32 1.1754944e-38, %v70_v22  ;;  %vm69_vm7 = vcmp.eq.f32.partialorder %v68_v24, 8.507059e+37 }
  0x8d   :  { %v106_v13 = vpop.eup %105 }
  0x8e   :  { %v108_v14 = vpop.eup %107  ;;  %v45_v15 = vmul.f32 %v106_v13, %v42_v11  ;;  %vm50_vm0 = vweird.f32 %v106_v13 }
  0x8f   :  { %v60_v16 = vmul.f32 %v108_v14, %v43_v12  ;;  %vm65_vm1 = vweird.f32 %v108_v14  ;;  %vm51_vm3 = vmor %vm49_vm2, %vm50_vm0 }
  0x90   :  { %v46_v17 = vsub.f32 1.0, %v45_v15  ;;  %vm66_vm6 = vmor %vm64_vm4, %vm65_vm1 }
  0x91   :  { %v61_v19 = vsub.f32 1.0, %v60_v16 }
  0x92   :  { %v47_v20 = vmul.f32 %v106_v13, %v46_v17 }
  0x93   :  { %v62_v23 = vmul.f32 %v108_v14, %v61_v19 }
  0x94   :  { %v48_v25 = vadd.f32 %v106_v13, %v47_v20 }
  0x95   :  { %v63_v27 = vadd.f32 %v108_v14, %v62_v23 }
  0x96   :  { %v52_v28 = vsel %vm51_vm3, %v106_v13, %v48_v25 }
  0x97   :  { %v57_v30 = vsel %vm54_vm5, %v56_v26, %v52_v28  ;;  %v67_v31 = vsel %vm66_vm6, %v108_v14, %v63_v27 }
  0x98   :  { %v72_v32 = vsel %vm69_vm7, %v71_v29, %v67_v31  ;;  %v74_v33 = vmul.f32 %v57_v30, %v26_v2 }
  0x99   :  { %v75_v34 = vmul.f32 %v72_v32, %v27_v3 }
  0x9a   :  { %76 = vst [vmem:[#allocation5] sm:$0xff] %v74_v33 }
  0x9b   :  { %77 = vst [vmem:[#allocation5 + $0x8] sm:$0xff] %v75_v34 }
  0x9c   :  { %88 = dma.vmem_to_hbm [thread:$0]  %s84_s1, 256, %s86_s18, [#allocation4]  }
  0x9d   :  { %159 = dma.done.wait [#allocation4], 256  }
  0x9e   :  { %160 = vsyncadd [#allocation4], 4294967040 }
  0x9f   :  { %93 = vsyncpa [#allocation3], 1 }
  0xa0   :  { %94 = vsyncpa [#allocation4], 1 }

</bundles_post_ra>
